<compile_context>
chip_gen: v5e
topology: v5e:2x2
jax: 0.10.0
libtpu: 0.0.40
codegen_flags: <defaults>
</compile_context>

<pallas_src>
import math

import jax
import jax.numpy as jnp
from jax import lax
from jax.experimental import pallas as pl
from jax.experimental.pallas import tpu as pltpu


def _pos_enc_kernel(x_ref, w_ref, off_ref, out_ref):
    # x_ref  : (bn, k_pad)      repacked input rows (r original rows per kernel row)
    # w_ref  : (k_pad, w_out)   block-diagonal flattened weights (0 in pad rows/cols)
    # off_ref: (1, w_out)       phase offset: pi/2 on cos columns, 0 on sin/pad columns
    # out_ref: (bn, w_out)      lane-dense output (r * d_model per kernel row)
    x = x_ref[...].astype(jnp.float32)
    # Phase accumulation on the MXU (each output column has exactly one nonzero
    # weight, so this is an exact per-column w*x in f32).
    phase = jnp.dot(x, w_ref[...],
                    preferred_element_type=jnp.float32,
                    precision=lax.Precision.HIGHEST)
    # cos(z) == sin(z + pi/2); pad columns: sin(0 + 0) == 0, so zero-padding is fused.
    out_ref[...] = jnp.sin(phase + off_ref[...]).astype(out_ref.dtype)


def make_positional_encoding_params(d_model, d_in, dtype=jnp.float32):
    """Deterministic parameter init matching the PyTorch __init__."""
    num_w = d_model // 2 // d_in
    num_pad = d_model - num_w * 2 * d_in
    w = 0.001 ** jnp.linspace(0.0, 1.0, num_w, dtype=jnp.float32)       # (num_w,)
    w = jnp.broadcast_to(w[None, :, None], (1, num_w, d_in)).astype(dtype)
    return w, num_pad


def _build_tables(w, d_model, r, k_pad):
    """Build the block-diagonal weight matrix and the sin/cos phase-offset row.

    Returns:
      wmat: (k_pad, r * d_model) f32, wmat[g*d_in+k, g*d_model+c] = w_full[c] when
            output column c reads input feature k, else 0 (and 0 off the diagonal
            blocks / in the padded contraction rows).
      off : (1, r * d_model) f32, pi/2 on cos columns, 0 on sin and pad columns.
    """
    _, num_w, d_in = w.shape
    flat_w = num_w * d_in
    num_pad = d_model - 2 * flat_w

    w_flat = w.astype(jnp.float32).reshape(flat_w)                      # col j*d_in+k -> w[j,k]
    w_full = jnp.concatenate(
        [w_flat, w_flat, jnp.zeros((num_pad,), jnp.float32)])           # (d_model,)
    col_k = jnp.concatenate(
        [jnp.tile(jnp.arange(d_in, dtype=jnp.int32), 2 * num_w),
         jnp.full((num_pad,), -1, dtype=jnp.int32)])                    # (d_model,)

    # W[k, c] = w_full[c] if column c reads input feature k, else 0.    (d_in, d_model)
    W = jnp.where(col_k[None, :] == jnp.arange(d_in, dtype=jnp.int32)[:, None],
                  w_full[None, :], 0.0).astype(jnp.float32)

    # Block-diagonal repack over r row-groups -> (r*d_in, r*d_model).
    wmat = jnp.einsum('gh,kc->gkhc', jnp.eye(r, dtype=jnp.float32), W)
    wmat = wmat.reshape(r * d_in, r * d_model)
    if k_pad > r * d_in:                                                # pad contraction dim
        wmat = jnp.pad(wmat, ((0, k_pad - r * d_in), (0, 0)))

    cols = jnp.arange(d_model)
    off = jnp.where((cols >= flat_w) & (cols < 2 * flat_w),
                    jnp.float32(math.pi / 2.0), jnp.float32(0.0))        # (d_model,)
    off = jnp.tile(off, (r,))[None, :]                                   # (1, r*d_model)
    return wmat, off


def _pick_block_rows(n_rows, row_bytes, target_tile_bytes=4 << 20):
    """Largest multiple-of-8 row count giving a ~4 MiB output tile, with >=2 grid
    steps whenever possible (so a v7x megacore can use both TensorCores)."""
    bn = max(8, (target_tile_bytes // max(1, row_bytes)) // 8 * 8)
    if n_rows >= 16:
        half = pl.cdiv(n_rows, 2)
        half = max(8, pl.cdiv(half, 8) * 8)
        bn = min(bn, half)
    if bn >= n_rows:
        return n_rows            # single full-extent block (no divisibility constraint)
    return bn


def positional_encoding(x, w, d_model, block_rows=None):
    """x: (1, N, d_in); w: (1, num_w, d_in) parameter; returns (N, d_model)."""
    x2 = jnp.squeeze(x, axis=0)                                          # (N, d_in)
    N, d_in = x2.shape
    out_dtype = x2.dtype

    # Lane-dense repack: pack r output rows of width d_model into one 128-wide
    # (or wider) kernel row so every vreg lane is live and stores are unmasked.
    r = max(1, 128 // d_model) if d_model < 128 else 1
    n_pad = pl.cdiv(N, r) * r
    if n_pad != N:                                                       # ragged row-group tail
        x2 = jnp.pad(x2, ((0, n_pad - N), (0, 0)))
    n_rows = n_pad // r
    w_out = r * d_model

    # Pad the contraction dim to a multiple of 8 (f32 sublane tile) for the MXU dot.
    k_dim = r * d_in
    k_pad = max(8, pl.cdiv(k_dim, 8) * 8)
    xv = x2.reshape(n_rows, k_dim)
    if k_pad != k_dim:
        xv = jnp.pad(xv, ((0, 0), (0, k_pad - k_dim)))

    wmat, off = _build_tables(w, d_model, r, k_pad)

    if block_rows is None:
        block_rows = _pick_block_rows(n_rows, w_out * jnp.dtype(out_dtype).itemsize)
    block_rows = int(min(block_rows, n_rows))
    grid = (pl.cdiv(n_rows, block_rows),)

    out = pl.pallas_call(
        _pos_enc_kernel,
        out_shape=jax.ShapeDtypeStruct((n_rows, w_out), out_dtype),
        grid=grid,
        in_specs=[
            pl.BlockSpec((block_rows, k_pad), lambda i: (i, 0)),
            pl.BlockSpec((k_pad, w_out), lambda i: (0, 0)),
            pl.BlockSpec((1, w_out), lambda i: (0, 0)),
        ],
        out_specs=pl.BlockSpec((block_rows, w_out), lambda i: (i, 0)),
        compiler_params=pltpu.CompilerParams(
            dimension_semantics=("parallel",),
            vmem_limit_bytes=32 << 20,
        ),
    )(xv, wmat, off)

    out = out.reshape(n_pad, d_model)                                    # row-major view undo
    if n_pad != N:
        out = out[:N]
    return out


def _reference(x, w, d_model):
    """Pure-JAX mirror of the PyTorch forward, for verification."""
    x = jnp.squeeze(x, axis=0)[:, None, :]                               # (N, 1, d_in)
    phase = w * x                                                        # (N, num_w, d_in)
    y = jnp.concatenate([jnp.sin(phase), jnp.cos(phase)], 1)             # (N, 2*num_w, d_in)
    y = y.reshape(y.shape[0], -1)
    pad = d_model - y.shape[1]
    if pad:
        y = jnp.pad(y, ((0, 0), (0, pad)))
    return y


if __name__ == "__main__":
    key = jax.random.PRNGKey(0)

    # Case 1: small shape matching the module spec (num_w=5, num_pad=2); r=4 repack,
    # single grid step.
    d_model, d_in, N = 32, 3, 8
    x = jax.random.normal(key, (1, N, d_in), dtype=jnp.float32)
    w, _ = make_positional_encoding_params(d_model, d_in)
    out = jax.block_until_ready(positional_encoding(x, w, d_model))
    ref = _reference(x, w, d_model)
    assert out.shape == (N, d_model), out.shape
    assert jnp.allclose(out, ref, atol=2e-5, rtol=2e-5), "mismatch vs reference (case 1)"

    # Case 2: r=2 repack, multi-step grid with a ragged last block (num_w=6, num_pad=4).
    d_model2, d_in2, N2 = 64, 5, 300
    key2 = jax.random.PRNGKey(0)
    x2 = jax.random.normal(key2, (1, N2, d_in2), dtype=jnp.float32)
    w2, _ = make_positional_encoding_params(d_model2, d_in2)
    out2 = jax.block_until_ready(positional_encoding(x2, w2, d_model2))
    ref2 = _reference(x2, w2, d_model2)
    assert out2.shape == (N2, d_model2), out2.shape
    assert jnp.allclose(out2, ref2, atol=2e-5, rtol=2e-5), "mismatch vs reference (case 2)"

    print("KERNEL_OK")
</pallas_src>

<mosaic_0001>
module attributes {stable_mosaic.version = 11 : i64} {
  func.func @_pos_enc_kernel(%arg0: i32, %arg1: memref<2x16xf32, #tpu.memory_space<vmem>>, %arg2: memref<16x128xf32, #tpu.memory_space<vmem>>, %arg3: memref<1x128xf32, #tpu.memory_space<vmem>>, %arg4: memref<2x128xf32, #tpu.memory_space<vmem>>) attributes {dimension_semantics = [#tpu.dimension_semantics<parallel>], iteration_bounds = array<i64: 1>, scalar_prefetch = 0 : i64, scratch_operands = 0 : i64, tpu.core_type = #tpu.core_type<tc>, window_params = [{transform_indices = @transform_0, window_bounds = array<i64: 2, 16>}, {pipeline_mode = #tpu.pipeline_mode<synchronous>, transform_indices = @transform_1, window_bounds = array<i64: 16, 128>}, {pipeline_mode = #tpu.pipeline_mode<synchronous>, transform_indices = @transform_2, window_bounds = array<i64: 1, 128>}, {transform_indices = @transform_3, window_bounds = array<i64: 2, 128>}]} {
    %c0 = arith.constant 0 : index
    %c0_0 = arith.constant 0 : index
    %0 = vector.load %arg1[%c0, %c0_0] : memref<2x16xf32, #tpu.memory_space<vmem>>, vector<2x16xf32>
    %c0_1 = arith.constant 0 : index
    %c0_2 = arith.constant 0 : index
    %1 = vector.load %arg2[%c0_1, %c0_2] : memref<16x128xf32, #tpu.memory_space<vmem>>, vector<16x128xf32>
    %cst = arith.constant dense<0.000000e+00> : vector<2x128xf32>
    %2 = tpu.matmul %0, %1, %cst {dimension_numbers = #tpu.dot_dimension_numbers<[1], [0], [0], [1], [0, 0, 1, 1], [], []>, precision = #tpu.contract_precision<fp32>} : vector<2x16xf32>, vector<16x128xf32>, vector<2x128xf32> -> vector<2x128xf32>
    %c0_3 = arith.constant 0 : index
    %c0_4 = arith.constant 0 : index
    %3 = vector.load %arg3[%c0_3, %c0_4] : memref<1x128xf32, #tpu.memory_space<vmem>>, vector<1x128xf32>
    %4 = vector.broadcast %3 : vector<1x128xf32> to vector<2x128xf32>
    %5 = arith.addf %2, %4 : vector<2x128xf32>
    %6 = math.sin %5 : vector<2x128xf32>
    %c0_5 = arith.constant 0 : index
    %c0_6 = arith.constant 0 : index
    %7 = vector.load %arg4[%c0_5, %c0_6] : memref<2x128xf32, #tpu.memory_space<vmem>>, vector<2x128xf32>
    tpu.vector_store %arg4[%c0_5, %c0_6], %6 {strides = array<i32>} : memref<2x128xf32, #tpu.memory_space<vmem>>, vector<2x128xf32>,
    return
  }
  func.func @transform_0(%arg0: i32) -> (i32, i32) {
    %c0_i32 = arith.constant 0 : i32
    %c0_i32_0 = arith.constant 0 : i32
    return %arg0, %c0_i32 : i32, i32
  }
  func.func @transform_1(%arg0: i32) -> (i32, i32) {
    %c0_i32 = arith.constant 0 : i32
    %c0_i32_0 = arith.constant 0 : i32
    %c0_i32_1 = arith.constant 0 : i32
    return %c0_i32, %c0_i32_0 : i32, i32
  }
  func.func @transform_2(%arg0: i32) -> (i32, i32) {
    %c0_i32 = arith.constant 0 : i32
    %c0_i32_0 = arith.constant 0 : i32
    %c0_i32_1 = arith.constant 0 : i32
    return %c0_i32, %c0_i32_0 : i32, i32
  }
  func.func @transform_3(%arg0: i32) -> (i32, i32) {
    %c0_i32 = arith.constant 0 : i32
    %c0_i32_0 = arith.constant 0 : i32
    return %arg0, %c0_i32 : i32, i32
  }
}

</mosaic_0001>

<bundles_post_ra>
// kernel: tpu_custom_call.1
= control target key start
LH: loop header
LB: loop body
LE: loop exit
PB: predicated region body
PF: predicated region fallthrough
CT: control target
= control target key end

     0   :  { %8 = vsyncpa [#allocation3], 0  ;;  %s583_s0 = inlined_call_operand.hbm [shape: f32[2,16], index: 0, kind: input, shape index: {}]   ;;  %s584_s1 = inlined_call_operand.hbm [shape: f32[16,128], index: 1, kind: input, shape index: {}]   ;;  %s585_s2 = inlined_call_operand.vmem [shape: f32[1,128], index: 2, kind: input, shape index: {}]   ;;  %s586_s3 = inlined_call_operand.hbm [shape: f32[2,128], index: 3, kind: output, shape index: {}]  }
   0x1   :  { %9 = vsyncpa [#allocation6], 0 }
   0x2   :  { %10 = vsyncpa [#allocation4], 0  ;;  %s16_s14 = sshll.u32 %s583_s0, 4  ;;  %s483_s15 = smov [#allocation2]   ;;  %s17_s14 = int_to_ptr.hbm [resolvable:$true] %s16_s14 }
   0x3   :  { %s18_s16 = sshll.u32 %s483_s15, 4  ;;  %s26_s19 = sshll.u32 %s584_s1, 4  ;;  %s19_s16 = int_to_ptr.vmem [resolvable:$true] %s18_s16  ;;  %s27_s19 = int_to_ptr.hbm [resolvable:$true] %s26_s19 }
   0x4   :  { %21 = dma.hbm_to_vmem [thread:$0]  %s17_s14, 32, %s19_s16, [#allocation3]  }
   0x5   :  { %s484_s20 = smov [#allocation5]   ;;  %s485_s22 = smov 128  }
   0x6   :  { %s28_s21 = sshll.u32 %s484_s20, 4  ;;  %s486_s23 = smov 8   ;;  %s29_s21 = int_to_ptr.vmem [resolvable:$true] %s28_s21 }
   0x7   :  { %34 = dma.hbm_to_vmem [thread:$0]  %s27_s19, 256, %s29_s21, [#allocation6], %s485_s22, %s485_s22, %s486_s23  }
   0x8   :  { %477 = dma.done.wait [#allocation3], 32  }
   0x9   :  { %478 = vsyncadd [#allocation3], 4294967264 }
   0xa   :  { %479 = dma.done.wait [#allocation6], 256  }
   0xb   :  { %480 = vsyncadd [#allocation6], 4294967040  ;;  %vm52_vm0 = vcmask 130048   ;;  %v47_v0 = vld [vmem:[#allocation5 + $0x8] sm:$0xff]  ;;  %v46_v1 = vld [vmem:[#allocation5] sm:$0xff]  ;;  %s378_s27 = sshll.u32 %s586_s3, 4  ;;  %s379_s27 = int_to_ptr.hbm [resolvable:$true] %s378_s27 }
   0xc   :  { %v45_v2 = vld [vmem:[#allocation2] sm:$0x3]  ;;  %v70_v3 = vand.u32 4294901760, %v47_v0  ;;  %v72_v4 = vand.u32 4294901760, %v46_v1  ;;  %v487_v43 = vmov 683565275  }
   0xd   :  { %v54_v5 = vsel %vm52_vm0, %v45_v2, 0  ;;  %v404_v19 = vld [vmem:[%s585_s2] ss:$0 sm:$0xff]  ;;  %v488_v45 = vmov 2475754826   ;;  %s494_s2 = smov [#allocation7]  }
   0xe   :  { %v74_v6 = vand.u32 4294901760, %v54_v5  ;;  %v98_v7 = vsub.f32 %v47_v0, %v70_v3  ;;  %71 = vmatpush.msra.mxu0 %v70_v3  ;;  %v104_v8 = vsub.f32 %v46_v1, %v72_v4  ;;  %155 = vmatpush.msra.mxu3 %v70_v3  ;;  %v489_v48 = vmov 2131351028   ;;  %s376_s24 = sshll.u32 %s494_s2, 4  ;;  %s377_s24 = int_to_ptr.vmem [resolvable:$true] %s376_s24 }
   0xf   :  { %v490_v51 = vmov 2102212464   ;;  %v491_v54 = vmov 920167782   ;;  %v492_v57 = vmov 1326507024  }
  0x10   :  { %v75_v9 = vsub.f32 %v54_v5, %v74_v6  ;;  %130 = vmatpush.msra.mxu2 %v98_v7  ;;  %73 = vmatpush.msra.mxu0 %v72_v4  ;;  %v99_v10 = vand.u32 4294901760, %v98_v7  ;;  %v105_v11 = vand.u32 4294901760, %v104_v8 }
  0x11   :  { %157 = vmatpush.msra.mxu3 %v72_v4 }
  0x12   :  { %v76_v12 = vand.u32 4294901760, %v75_v9  ;;  %133 = vmatpush.msra.mxu2 %v104_v8  ;;  %v100_v13 = vsub.f32 %v98_v7, %v99_v10  ;;  %182 = vmatpush.msrb.mxu0 %v99_v10  ;;  %v106_v14 = vsub.f32 %v104_v8, %v105_v11 }
  0x13   :  { %136 = vmatmul.f32.vlgmr.msra.gmra.mxu2 %v75_v9 }
  0x14   :  { %v77_v15 = vsub.f32 %v75_v9, %v76_v12  ;;  %161 = vmatmul.f32.vlgmr.msra.gmra.mxu3 %v76_v12  ;;  %v101_v16 = vand.u32 4294901760, %v100_v13  ;;  %v107_v17 = vand.u32 4294901760, %v106_v14  ;;  %186 = vmatpush.msrb.mxu0 %v105_v11 }
  0x16   :  { %v78_v18 = vand.u32 4294901760, %v77_v15  ;;  %102 = vmatpush.msra.mxu1 %v101_v16 }
  0x18   :  { %79 = vmatmul.f32.vlgmr.msra.gmra.mxu0 %v78_v18  ;;  %108 = vmatpush.msra.mxu1 %v107_v17 }
  0x19   :  { %110 = vmatmul.f32.vlgmr.msra.gmra.mxu1 %v74_v6 }
  0x1a   :  { %207 = vmatpush.msrb.mxu1 %v70_v3 }
  0x1c   :  { %209 = vmatpush.msrb.mxu1 %v72_v4 }
  0x20   :  { %188 = vmatmul.f32.vlgmr.msrb.gmra.mxu0 %v74_v6 }
  0x21   :  { %211 = vmatmul.f32.vlgmr.msrb.gmra.mxu1 %v74_v6 }
  0x95   :  { %v80_v20 = vpop.f32.mrf.mxu0 }
  0x96   :  { %v81_v21 = vadd.f32 %v404_v19, %v80_v20  ;;  %v111_v22 = vpop.f32.mrf.mxu1  ;;  %v137_v23 = vpop.f32.mrf.mxu2 }
  0x97   :  { %v162_v25 = vpop.f32.mrf.mxu3 }
  0x98   :  { %v112_v24 = vadd.f32 %v111_v22, %v81_v21 }
  0x9a   :  { %v138_v26 = vadd.f32 %v137_v23, %v112_v24 }
  0x9c   :  { %v163_v27 = vadd.f32 %v162_v25, %v138_v26 }
  0x9d   :  { %v189_v28 = vpop.f32.mrf.mxu0 }
  0x9e   :  { %v190_v29 = vadd.f32 %v189_v28, %v163_v27  ;;  %v212_v30 = vpop.f32.mrf.mxu1  ;;  %v493_v27 = vmov 0  }
  0xa0   :  { %v524_v31 = vadd.f32 %v212_v30, %v190_v29 }
  0xa2   :  { %v218_v32 = vand.u32 2139095040, %v524_v31  ;;  %v215_v35 = vand.u32 2147483647, %v524_v31  ;;  %vm217_vm13 = vcmp.lt.s32.totalorder %v524_v31, 0 }
  0xa4   :  { %v219_v33 = vshrl.u32 %v218_v32, 23  ;;  %v222_v37 = vand.u32 8388607, %v215_v35  ;;  %vm216_vm14 = vcmp.le.f32.partialorder %v215_v35, 0.7853982 }
  0xa6   :  { %v389_v34 = vadd.s32 4294967169, %v219_v33  ;;  %v223_v41 = vor.u32 8388608, %v222_v37 }
  0xa8   :  { %v225_v36 = vadd.s32 1, %v389_v34  ;;  %v541_v0 = vshll.u32 %v223_v41, 8 }
  0xaa   :  { %vm226_vm1 = vcmp.gt.s32.totalorder %v225_v36, 0  ;;  %v264_v9 = vand.u32 65535, %v541_v0  ;;  %v265_v10 = vshrl.u32 %v541_v0, 16 }
  0xab   :  { %v227_v38 = vsel %vm226_vm1, %v225_v36, 0 }
  0xac   :  { %v229_v39 = vand.u32 31, %v227_v38  ;;  %v532_v42 = vshrl.u32 %v227_v38, 5 }
  0xae   :  { %v530_v40 = vsub.s32 32, %v229_v39  ;;  %v232_v44 = vshll.u32 %v487_v43, %v229_v39  ;;  %v235_v46 = vshll.u32 %v488_v45, %v229_v39  ;;  %v238_v50 = vshll.u32 %v489_v48, %v229_v39 }
  0xaf   :  { %v241_v53 = vshll.u32 %v490_v51, %v229_v39  ;;  %v244_v56 = vshll.u32 %v491_v54, %v229_v39  ;;  %vm247_vm2 = vcmp.lt.s32.totalorder %v532_v42, 1  ;;  %vm250_vm3 = vcmp.lt.s32.totalorder %v532_v42, 4 }
  0xb0   :  { %v233_v47 = vshrl.u32 %v488_v45, %v530_v40  ;;  %v236_v49 = vshrl.u32 %v489_v48, %v530_v40  ;;  %v239_v52 = vshrl.u32 %v490_v51, %v530_v40  ;;  %v242_v55 = vshrl.u32 %v491_v54, %v530_v40 }
  0xb1   :  { %v245_v58 = vshrl.u32 %v492_v57, %v530_v40  ;;  %vm249_vm4 = vcmp.lt.s32.totalorder %v532_v42, 3  ;;  %vm248_vm5 = vcmp.lt.s32.totalorder %v532_v42, 2  ;;  %v231_v38 = vshrl.u32 %v487_v43, %v530_v40 }
  0xb2   :  { %v234_v59 = vor.u32 %v233_v47, %v232_v44  ;;  %v237_v60 = vor.u32 %v236_v49, %v235_v46  ;;  %v240_v61 = vor.u32 %v239_v52, %v238_v50  ;;  %v243_v62 = vor.u32 %v242_v55, %v241_v53 }
  0xb3   :  { %v246_v63 = vor.u32 %v245_v58, %v244_v56 }
  0xb4   :  { %v255_v1 = vsel %vm247_vm2, %v234_v59, %v237_v60  ;;  %v259_v2 = vsel %vm247_vm2, %v237_v60, %v240_v61  ;;  %v256_v3 = vsel %vm250_vm3, %v243_v62, 920167782  ;;  %v252_v34 = vsel %vm250_vm3, %v240_v61, 2102212464 }
  0xb5   :  { %v260_v4 = vsel %vm250_vm3, %v246_v63, 1326507024  ;;  %v257_v5 = vsel %vm249_vm4, %v240_v61, %v256_v3  ;;  %v251_v47 = vsel %vm247_vm2, %v231_v38, %v234_v59  ;;  %v253_v48 = vsel %vm249_vm4, %v237_v60, %v252_v34 }
  0xb6   :  { %v261_v6 = vsel %vm249_vm4, %v243_v62, %v260_v4  ;;  %v258_v7 = vsel %vm248_vm5, %v255_v1, %v257_v5  ;;  %v254_v40 = vsel %vm248_vm5, %v251_v47, %v253_v48  ;;  %vm358_vm2 = vweird.f32 %v524_v31 }
  0xb7   :  { %v262_v8 = vsel %vm248_vm5, %v259_v2, %v261_v6  ;;  %v288_v13 = vand.u32 65535, %v258_v7  ;;  %v289_v14 = vshrl.u32 %v258_v7, 16  ;;  %v308_v56 = vmul.u32 %v541_v0, %v254_v40 }
  0xb8   :  { %v266_v11 = vand.u32 65535, %v262_v8  ;;  %v267_v12 = vshrl.u32 %v262_v8, 16 }
  0xb9   :  { %v291_v17 = vmul.u32 %v289_v14, %v264_v9  ;;  %v292_v18 = vmul.u32 %v288_v13, %v265_v10  ;;  %v290_v22 = vmul.u32 %v288_v13, %v264_v9  ;;  %v293_v26 = vmul.u32 %v289_v14, %v265_v10 }
  0xba   :  { %v269_v15 = vmul.u32 %v267_v12, %v264_v9  ;;  %v270_v16 = vmul.u32 %v266_v11, %v265_v10  ;;  %v268_v19 = vmul.u32 %v266_v11, %v264_v9  ;;  %v271_v21 = vmul.u32 %v267_v12, %v265_v10 }
  0xbb   :  { %v294_v23 = vshll.u32 %v291_v17, 16  ;;  %v296_v29 = vshll.u32 %v292_v18, 16  ;;  %v295_v45 = vshrl.u32 %v291_v17, 16  ;;  %v297_v51 = vshrl.u32 %v292_v18, 16 }
  0xbc   :  { %v272_v20 = vshll.u32 %v269_v15, 16  ;;  %v274_v24 = vshll.u32 %v270_v16, 16  ;;  %v273_v39 = vshrl.u32 %v269_v15, 16  ;;  %v275_v49 = vshrl.u32 %v270_v16, 16 }
  0xbd   :  { %vm298_vm7 = vc.u32 %v290_v22, %v294_v23  ;;  %v300_v30 = vadd.s32 %v294_v23, %v290_v22 }
  0xbe   :  { %vm276_vm6 = vc.u32 %v268_v19, %v272_v20  ;;  %v278_v25 = vadd.s32 %v272_v20, %v268_v19  ;;  %v299_v33 = vsel %vm298_vm7, 1, %v493_v27 }
  0xbf   :  { %v277_v28 = vsel %vm276_vm6, 1, %v493_v27  ;;  %v301_v37 = vadd.s32 %v299_v33, %v293_v26  ;;  %vm302_vm9 = vc.u32 %v300_v30, %v296_v29  ;;  %v304_v54 = vadd.s32 %v300_v30, %v296_v29 }
  0xc0   :  { %v279_v32 = vadd.s32 %v277_v28, %v271_v21  ;;  %vm280_vm8 = vc.u32 %v278_v25, %v274_v24  ;;  %v303_v44 = vsel %vm302_vm9, 1, %v493_v27 }
  0xc1   :  { %v281_v36 = vsel %vm280_vm8, 1, %v493_v27  ;;  %v305_v46 = vadd.s32 %v303_v44, %v301_v37 }
  0xc2   :  { %v283_v41 = vadd.s32 %v281_v36, %v279_v32 }
  0xc3   :  { %v306_v52 = vadd.s32 %v305_v46, %v295_v45 }
  0xc4   :  { %v284_v50 = vadd.s32 %v283_v41, %v273_v39 }
  0xc5   :  { %v307_v43 = vadd.s32 %v306_v52, %v297_v51 }
  0xc6   :  { %v285_v53 = vadd.s32 %v284_v50, %v275_v49 }
  0xc7   :  { %v311_v55 = vadd.s32 1, %v307_v43 }
  0xc8   :  { %vm310_vm10 = vc.u32 %v285_v53, %v304_v54  ;;  %v309_v42 = vadd.s32 %v304_v54, %v285_v53 }
  0xc9   :  { %v312_v57 = vsel %vm310_vm10, %v311_v55, %v307_v43 }
  0xca   :  { %v313_v58 = vadd.s32 %v312_v57, %v308_v56 }
  0xcc   :  { %v314_v59 = vadd.s32 536870912, %v313_v58 }
  0xce   :  { %v315_v61 = vshrl.u32 %v314_v59, 30 }
  0xd0   :  { %v316_v62 = vshll.u32 %v315_v61, 30  ;;  %v339_v18 = vsub.s32 4, %v315_v61 }
  0xd2   :  { %v317_v60 = vsub.s32 %v313_v58, %v316_v62  ;;  %v340_v22 = vsel %vm217_vm13, %v339_v18, %v315_v61 }
  0xd3   :  { %v342_v25 = vsel %vm216_vm14, 0, %v340_v22 }
  0xd4   :  { %vm318_vm11 = vcmp.lt.s32.totalorder %v317_v60, 0  ;;  %v319_v63 = vsub.s32 0, %v317_v60  ;;  %v359_v30 = vadd.s32 3, %v342_v25 }
  0xd6   :  { %v320_v1 = vsel %vm318_vm11, %v319_v63, %v317_v60  ;;  %v360_v36 = vand.u32 3, %v359_v30 }
  0xd7   :  { %v321_v2 = vclz %v320_v1 }
  0xd8   :  { %vm362_vm15 = vcmp.eq.s32.totalorder %v360_v36, 0  ;;  %vm365_vm0 = vcmp.eq.s32.totalorder %v360_v36, 2  ;;  %vm361_vm1 = vcmp.lt.s32.totalorder %v360_v36, 2 }
  0xd9   :  { %v390_v3 = vadd.s32 4294967294, %v321_v2 }
  0xdb   :  { %vm391_vm12 = vcmp.lt.s32.totalorder %v390_v3, 0 }
  0xdc   :  { %v324_v4 = vsel %vm391_vm12, 0, %v390_v3 }
  0xdd   :  { %v325_v5 = vsub.s32 32, %v324_v4  ;;  %v329_v6 = vsub.s32 4294967266, %v324_v4  ;;  %v326_v7 = vshll.u32 %v317_v60, %v324_v4 }
  0xdf   :  { %v327_v8 = vshrl.u32 %v309_v42, %v325_v5  ;;  %v330_v9 = vadd.s32 127, %v329_v6 }
  0xe1   :  { %v328_v0 = vor.u32 %v327_v8, %v326_v7  ;;  %v331_v10 = vshll.u32 %v330_v9, 23 }
  0xe3   :  { %v332_v11 = vor.u32 4788187, %v331_v10  ;;  %v335_v13 = vcvt.s32.f32 %v328_v0 }
  0xe5   :  { %v333_v12 = vand.u32 2147483647, %v332_v11 }
  0xe7   :  { %v336_v14 = vmul.f32 %v335_v13, %v333_v12 }
  0xe9   :  { %v337_v15 = vxor.u32 2147483648, %v336_v14 }
  0xeb   :  { %v338_v16 = vsel %vm217_vm13, %v337_v15, %v336_v14 }
  0xec   :  { %v341_v17 = vsel %vm216_vm14, %v524_v31, %v338_v16 }
  0xed   :  { %v343_v19 = vmul.f32 %v341_v17, %v341_v17 }
  0xef   :  { %v344_v20 = vmul.f32 -0.001358992, %v343_v19  ;;  %v351_v21 = vmul.f32 -0.00019511016, %v343_v19 }
  0xf1   :  { %v345_v23 = vadd.f32 0.041655596, %v344_v20  ;;  %v352_v24 = vadd.f32 0.008332121, %v351_v21 }
  0xf3   :  { %v346_v26 = vmul.f32 %v345_v23, %v343_v19  ;;  %v353_v27 = vmul.f32 %v352_v24, %v343_v19 }
  0xf5   :  { %v347_v28 = vadd.f32 -0.4999988, %v346_v26  ;;  %v354_v29 = vadd.f32 -0.16666654, %v353_v27 }
  0xf7   :  { %v348_v32 = vmul.f32 %v347_v28, %v343_v19  ;;  %v355_v33 = vmul.f32 %v354_v29, %v343_v19 }
  0xf9   :  { %v349_v34 = vadd.f32 1.0, %v348_v32  ;;  %v356_v35 = vadd.f32 1.0, %v355_v33 }
  0xfb   :  { %v357_v37 = vmul.f32 %v356_v35, %v341_v17  ;;  %v366_v38 = vxor.u32 2147483648, %v349_v34 }
  0xfd   :  { %v363_v39 = vxor.u32 2147483648, %v357_v37  ;;  %v367_v44 = vsel %vm365_vm0, %v366_v38, %v357_v37 }
  0xff   :  { %v364_v41 = vsel %vm362_vm15, %v349_v34, %v363_v39 }
 0x100   :  { %v368_v45 = vsel %vm361_vm1, %v364_v41, %v367_v44 }
 0x101   :  { %v369_v46 = vsel %vm358_vm2, nan, %v368_v45 }
 0x102   :  { %370 = vst [vmem:[#allocation7] sm:$0x3] %v369_v46 }
 0x103   :  { %381 = dma.vmem_to_hbm [thread:$0]  %s377_s24, 32, %s379_s27, [#allocation4]  }
 0x104   :  { %481 = dma.done.wait [#allocation4], 32  }
 0x105   :  { %482 = vsyncadd [#allocation4], 4294967264 }
 0x106   :  { %386 = vsyncpa [#allocation3], 1 }
 0x107   :  { %387 = vsyncpa [#allocation6], 1 }
 0x108   :  { %388 = vsyncpa [#allocation4], 1 }

</bundles_post_ra>
